<compile_context>
chip_gen: v6e
topology: v6e:2x2x1
jax: 0.10.0
libtpu: 0.0.40
codegen_flags: <defaults>
</compile_context>

<pallas_src>
import functools
import math

import jax
import jax.numpy as jnp
from jax import lax
from jax.experimental import pallas as pl
from jax.experimental.pallas import tpu as pltpu

_INV_SQRT2 = 1.0 / math.sqrt(2.0)
_SQRT_2_OVER_PI = math.sqrt(2.0 / math.pi)


def _round_up(x: int, m: int) -> int:
    return (x + m - 1) // m * m


def _vmem_capacity_bytes() -> int:
    """Per-TensorCore physical VMEM (generation aware, conservative fallback)."""
    try:
        return int(pltpu.get_tpu_info().vmem_capacity_bytes)
    except Exception:
        pass
    try:
        kind = jax.devices()[0].device_kind.lower()
        if "v5" in kind or "v6" in kind:
            return 128 * 1024 * 1024
    except Exception:
        pass
    return 64 * 1024 * 1024  # v7x per-TensorCore (safe lower bound)


def _gelu(h, approximate: bool):
    if approximate:
        # tanh approximation: exp/tanh goes to the EUP slot instead of the
        # long erf polynomial on the VPU.  Not bit-identical to torch.nn.GELU().
        inner = _SQRT_2_OVER_PI * (h + 0.044715 * h * h * h)
        return 0.5 * h * (1.0 + jnp.tanh(inner))
    # Exact erf GELU (matches torch.nn.GELU() default).
    return 0.5 * h * (1.0 + lax.erf(h * _INV_SQRT2))


# ----------------------------------------------------------------------------
# Kernels
# ----------------------------------------------------------------------------
def _mlp_kernel_resident(x_ref, w1_ref, b1_ref, w2_ref, b2_ref, o_ref, *,
                         approximate):
    # Grid: (M_p // tm,).  Weight/bias index_maps are constant -> fetched from
    # HBM once and held resident in VMEM across all M tiles.
    x = x_ref[...].astype(jnp.bfloat16)                      # cast in-kernel
    h = jnp.dot(x, w1_ref[...], preferred_element_type=jnp.float32)
    h = _gelu(h + b1_ref[...], approximate)
    y = jnp.dot(h.astype(jnp.bfloat16), w2_ref[...],
                preferred_element_type=jnp.float32)
    o_ref[...] = (y + b2_ref[...]).astype(o_ref.dtype)


def _mlp_kernel_tiled(x_ref, w1_ref, b1_ref, w2_ref, b2_ref, o_ref, acc_ref, *,
                      approximate):
    # Grid: (M_p // tm, H_p // th); H (reduction) axis last, output revisited.
    h_idx = pl.program_id(1)

    x = x_ref[...].astype(jnp.bfloat16)
    h = jnp.dot(x, w1_ref[...], preferred_element_type=jnp.float32)
    h = _gelu(h + b1_ref[...], approximate)
    partial = jnp.dot(h.astype(jnp.bfloat16), w2_ref[...],
                      preferred_element_type=jnp.float32)

    @pl.when(h_idx == 0)
    def _():  # init with first partial (b2 folded in) — no zero+add pass
        acc_ref[...] = partial + b2_ref[...]

    @pl.when(h_idx != 0)
    def _():
        acc_ref[...] += partial

    @pl.when(h_idx == pl.num_programs(1) - 1)
    def _():
        o_ref[...] = acc_ref[...].astype(o_ref.dtype)


# ----------------------------------------------------------------------------
# Wrapper
# ----------------------------------------------------------------------------
@functools.partial(jax.jit, static_argnames=("tile_m", "tile_h", "approximate"))
def mlp_pallas(x, w1, b1, w2, b2, *, tile_m=512, tile_h=512, approximate=False):
    """x: (..., C) -> (..., Co), computed with a Pallas TPU kernel."""
    orig_shape = x.shape
    C = orig_shape[-1]
    H = w1.shape[1]
    Co = w2.shape[1]
    out_dtype = x.dtype
    x_item = jnp.dtype(x.dtype).itemsize
    out_item = jnp.dtype(out_dtype).itemsize

    x2 = x.reshape(-1, C)
    M = x2.shape[0]

    # Lane-dense padding of channel dims to multiples of 128.
    C_p = _round_up(C, 128)
    H_p = _round_up(H, 128)
    Co_p = _round_up(Co, 128)
    M128 = _round_up(max(M, 1), 128)

    # Generation-aware VMEM budget (headroom for compiler scratch / pipelining).
    budget = min(_vmem_capacity_bytes() - 8 * 1024 * 1024, 100 * 1024 * 1024)

    # Resident-weight footprint (bf16 weights + f32 biases) and per-M-row cost
    # (double-buffered x & out tiles + f32 hidden + bf16 casts + f32 result).
    w_bytes = 2 * (C_p * H_p + H_p * Co_p) + 4 * (H_p + Co_p)
    row_bytes = (2 * C_p * x_item + 2 * C_p
                 + 6 * H_p
                 + 2 * Co_p * out_item + 4 * Co_p)
    resident = (w_bytes + 128 * row_bytes) <= budget

    def pad2(a, rows, cols, dtype=None):
        if dtype is not None and a.dtype != dtype:
            a = a.astype(dtype)
        pr, pc = rows - a.shape[0], cols - a.shape[1]
        if pr or pc:
            a = jnp.pad(a, ((0, pr), (0, pc)))
        return a

    def pad1(a, n, dtype):
        if a.dtype != dtype:
            a = a.astype(dtype)
        if n - a.shape[0]:
            a = jnp.pad(a, (0, n - a.shape[0]))
        return a.reshape(1, n)

    if resident:
        # ---------------- resident-weight path (single grid axis) -----------
        tm = min(_round_up(tile_m, 128), M128)
        if M128 >= 256:  # >= 2 M tiles so both v7x TensorCores get work
            tm = min(tm, max(128, (M128 // 2) // 128 * 128))
        tm = min(tm, max(128, (budget - w_bytes) // row_bytes // 128 * 128))
        M_p = _round_up(M, tm)

        x_p = pad2(x2, M_p, C_p)                      # original dtype, pad only
        w1_p = pad2(w1, C_p, H_p, jnp.bfloat16)       # no-op cast if already bf16
        w2_p = pad2(w2, H_p, Co_p, jnp.bfloat16)
        b1_p = pad1(b1, H_p, jnp.float32)
        b2_p = pad1(b2, Co_p, jnp.float32)

        grid = (M_p // tm,)
        cost = pl.CostEstimate(
            flops=2 * M_p * (C_p * H_p + H_p * Co_p),
            transcendentals=M_p * H_p,
            bytes_accessed=(M_p * C_p * x_item
                            + w1_p.size * 2 + w2_p.size * 2
                            + b1_p.size * 4 + b2_p.size * 4
                            + M_p * Co_p * out_item),
        )

        out = pl.pallas_call(
            functools.partial(_mlp_kernel_resident, approximate=approximate),
            out_shape=jax.ShapeDtypeStruct((M_p, Co_p), out_dtype),
            grid_spec=pltpu.PrefetchScalarGridSpec(
                num_scalar_prefetch=0,
                grid=grid,
                in_specs=[
                    pl.BlockSpec((tm, C_p), lambda i: (i, 0)),     # x rows tile
                    pl.BlockSpec((C_p, H_p), lambda i: (0, 0)),    # w1 (resident)
                    pl.BlockSpec((1, H_p), lambda i: (0, 0)),      # b1 (resident)
                    pl.BlockSpec((H_p, Co_p), lambda i: (0, 0)),   # w2 (resident)
                    pl.BlockSpec((1, Co_p), lambda i: (0, 0)),     # b2 (resident)
                ],
                out_specs=pl.BlockSpec((tm, Co_p), lambda i: (i, 0)),
            ),
            compiler_params=pltpu.CompilerParams(
                dimension_semantics=("parallel",),
                vmem_limit_bytes=budget,
            ),
            cost_estimate=cost,
        )(x_p, w1_p, b1_p, w2_p, b2_p)

    else:
        # ---------------- H-tiled fallback (very large C/H) ------------------
        th = min(max(_round_up(tile_h, 128), 256), H_p)
        tm = min(_round_up(tile_m, 128), M128)
        if M128 >= 256:
            tm = min(tm, max(128, (M128 // 2) // 128 * 128))

        def footprint(tm_, th_):
            return (2 * (tm_ * C_p * x_item + C_p * th_ * 2 + th_ * 4
                         + th_ * Co_p * 2 + Co_p * 4 + tm_ * Co_p * out_item)
                    + tm_ * Co_p * 4                         # f32 acc scratch
                    + tm_ * th_ * 6 + tm_ * C_p * 2 + tm_ * Co_p * 4)

        while tm > 128 and footprint(tm, th) > budget:
            tm -= 128
        while th > 256 and footprint(tm, th) > budget:
            th -= 128

        H_pp = _round_up(H_p, th)
        M_p = _round_up(M, tm)

        x_p = pad2(x2, M_p, C_p)
        w1_p = pad2(w1, C_p, H_pp, jnp.bfloat16)
        w2_p = pad2(w2, H_pp, Co_p, jnp.bfloat16)
        b1_p = pad1(b1, H_pp, jnp.float32)
        b2_p = pad1(b2, Co_p, jnp.float32)

        grid = (M_p // tm, H_pp // th)
        cost = pl.CostEstimate(
            flops=2 * M_p * (C_p * H_pp + H_pp * Co_p),
            transcendentals=M_p * H_pp,
            bytes_accessed=(M_p * C_p * x_item
                            + grid[0] * (C_p * H_pp * 2 + H_pp * Co_p * 2
                                         + H_pp * 4)          # weight re-stream
                            + Co_p * 4 + M_p * Co_p * out_item),
        )

        out = pl.pallas_call(
            functools.partial(_mlp_kernel_tiled, approximate=approximate),
            out_shape=jax.ShapeDtypeStruct((M_p, Co_p), out_dtype),
            grid_spec=pltpu.PrefetchScalarGridSpec(
                num_scalar_prefetch=0,
                grid=grid,
                in_specs=[
                    pl.BlockSpec((tm, C_p), lambda i, h: (i, 0)),    # x rows
                    pl.BlockSpec((C_p, th), lambda i, h: (0, h)),    # w1 H-tile
                    pl.BlockSpec((1, th), lambda i, h: (0, h)),      # b1 H-tile
                    pl.BlockSpec((th, Co_p), lambda i, h: (h, 0)),   # w2 H-tile
                    pl.BlockSpec((1, Co_p), lambda i, h: (0, 0)),    # b2
                ],
                out_specs=pl.BlockSpec((tm, Co_p), lambda i, h: (i, 0)),
                scratch_shapes=[pltpu.VMEM((tm, Co_p), jnp.float32)],
            ),
            compiler_params=pltpu.CompilerParams(
                dimension_semantics=("parallel", "arbitrary"),
                vmem_limit_bytes=budget,
            ),
            cost_estimate=cost,
        )(x_p, w1_p, b1_p, w2_p, b2_p)

    return out[:M, :Co].reshape(*orig_shape[:-1], Co)


def _reference_mlp(x, w1, b1, w2, b2):
    h = jnp.einsum("...c,ch->...h", x, w1) + b1
    h = 0.5 * h * (1.0 + lax.erf(h / jnp.sqrt(2.0)))
    return jnp.einsum("...h,ho->...o", h, w2) + b2


if __name__ == "__main__":
    key = jax.random.PRNGKey(0)
    kx, k1, k2, k3, k4, kx2 = jax.random.split(key, 6)

    # Small shapes consistent with the module's forward on (B, N, C) tokens.
    B, N = 2, 16
    in_features = 32
    hidden_features = 64
    out_features = in_features  # default: out_features = in_features

    x = jax.random.normal(kx, (B, N, in_features), dtype=jnp.float32)
    # Deterministic parameters (nn.Linear shapes, stored transposed).
    w1 = jax.random.normal(k1, (in_features, hidden_features), jnp.float32) * 0.05
    b1 = jax.random.normal(k2, (hidden_features,), jnp.float32) * 0.05
    w2 = jax.random.normal(k3, (hidden_features, out_features), jnp.float32) * 0.05
    b2 = jax.random.normal(k4, (out_features,), jnp.float32) * 0.05

    y = mlp_pallas(x, w1, b1, w2, b2)
    jax.block_until_ready(y)
    y_ref = _reference_mlp(x, w1, b1, w2, b2)
    assert y.shape == (B, N, out_features)
    # bf16 matmul inputs with f32 accumulation -> slightly looser tolerance.
    assert jnp.allclose(y, y_ref, atol=2e-2, rtol=2e-2), "mismatch vs reference"

    # Second case with more tokens: exercises a multi-tile (parallel) M grid.
    x_big = jax.random.normal(kx2, (2, 160, in_features), dtype=jnp.float32)
    y_big = mlp_pallas(x_big, w1, b1, w2, b2)
    jax.block_until_ready(y_big)
    y_big_ref = _reference_mlp(x_big, w1, b1, w2, b2)
    assert jnp.allclose(y_big, y_big_ref, atol=2e-2, rtol=2e-2), "mismatch (big)"

    print("KERNEL_OK")
</pallas_src>

<mosaic_0001>
module attributes {stable_mosaic.version = 11 : i64} {
  func.func @_mlp_kernel_resident(%arg0: i32, %arg1: memref<128x128xf32, #tpu.memory_space<vmem>>, %arg2: memref<128x128xbf16, #tpu.memory_space<vmem>>, %arg3: memref<1x128xf32, #tpu.memory_space<vmem>>, %arg4: memref<128x128xbf16, #tpu.memory_space<vmem>>, %arg5: memref<1x128xf32, #tpu.memory_space<vmem>>, %arg6: memref<128x128xf32, #tpu.memory_space<vmem>>) attributes {dimension_semantics = [#tpu.dimension_semantics<parallel>], iteration_bounds = array<i64: 1>, scalar_prefetch = 0 : i64, scratch_operands = 0 : i64, tpu.core_type = #tpu.core_type<tc>, window_params = [{transform_indices = @transform_0, window_bounds = array<i64: 128, 128>}, {pipeline_mode = #tpu.pipeline_mode<synchronous>, transform_indices = @transform_1, window_bounds = array<i64: 128, 128>}, {pipeline_mode = #tpu.pipeline_mode<synchronous>, transform_indices = @transform_2, window_bounds = array<i64: 1, 128>}, {pipeline_mode = #tpu.pipeline_mode<synchronous>, transform_indices = @transform_3, window_bounds = array<i64: 128, 128>}, {pipeline_mode = #tpu.pipeline_mode<synchronous>, transform_indices = @transform_4, window_bounds = array<i64: 1, 128>}, {transform_indices = @transform_5, window_bounds = array<i64: 128, 128>}]} {
    %c0 = arith.constant 0 : index
    %c0_0 = arith.constant 0 : index
    %0 = vector.load %arg1[%c0, %c0_0] : memref<128x128xf32, #tpu.memory_space<vmem>>, vector<128x128xf32>
    %1 = arith.truncf %0 : vector<128x128xf32> to vector<128x128xbf16>
    %c0_1 = arith.constant 0 : index
    %c0_2 = arith.constant 0 : index
    %2 = vector.load %arg2[%c0_1, %c0_2] : memref<128x128xbf16, #tpu.memory_space<vmem>>, vector<128x128xbf16>
    %cst = arith.constant dense<0.000000e+00> : vector<128x128xf32>
    %3 = tpu.matmul %1, %2, %cst {dimension_numbers = #tpu.dot_dimension_numbers<[1], [0], [0], [1], [0, 0, 1, 1], [], []>} : vector<128x128xbf16>, vector<128x128xbf16>, vector<128x128xf32> -> vector<128x128xf32>
    %c0_3 = arith.constant 0 : index
    %c0_4 = arith.constant 0 : index
    %4 = vector.load %arg3[%c0_3, %c0_4] : memref<1x128xf32, #tpu.memory_space<vmem>>, vector<1x128xf32>
    %5 = vector.broadcast %4 : vector<1x128xf32> to vector<128x128xf32>
    %6 = arith.addf %3, %5 : vector<128x128xf32>
    %cst_5 = arith.constant 5.000000e-01 : f32
    %7 = vector.broadcast %cst_5 : f32 to vector<128x128xf32>
    %8 = arith.mulf %7, %6 : vector<128x128xf32>
    %cst_6 = arith.constant 0.707106769 : f32
    %9 = vector.broadcast %cst_6 : f32 to vector<128x128xf32>
    %10 = arith.mulf %6, %9 : vector<128x128xf32>
    %11 = math.erf %10 : vector<128x128xf32>
    %cst_7 = arith.constant 1.000000e+00 : f32
    %12 = vector.broadcast %cst_7 : f32 to vector<128x128xf32>
    %13 = arith.addf %12, %11 : vector<128x128xf32>
    %14 = arith.mulf %8, %13 : vector<128x128xf32>
    %15 = arith.truncf %14 : vector<128x128xf32> to vector<128x128xbf16>
    %c0_8 = arith.constant 0 : index
    %c0_9 = arith.constant 0 : index
    %16 = vector.load %arg4[%c0_8, %c0_9] : memref<128x128xbf16, #tpu.memory_space<vmem>>, vector<128x128xbf16>
    %cst_10 = arith.constant dense<0.000000e+00> : vector<128x128xf32>
    %17 = tpu.matmul %15, %16, %cst_10 {dimension_numbers = #tpu.dot_dimension_numbers<[1], [0], [0], [1], [0, 0, 1, 1], [], []>} : vector<128x128xbf16>, vector<128x128xbf16>, vector<128x128xf32> -> vector<128x128xf32>
    %c0_11 = arith.constant 0 : index
    %c0_12 = arith.constant 0 : index
    %18 = vector.load %arg5[%c0_11, %c0_12] : memref<1x128xf32, #tpu.memory_space<vmem>>, vector<1x128xf32>
    %19 = vector.broadcast %18 : vector<1x128xf32> to vector<128x128xf32>
    %20 = arith.addf %17, %19 : vector<128x128xf32>
    %c0_13 = arith.constant 0 : index
    %c0_14 = arith.constant 0 : index
    %21 = vector.load %arg6[%c0_13, %c0_14] : memref<128x128xf32, #tpu.memory_space<vmem>>, vector<128x128xf32>
    tpu.vector_store %arg6[%c0_13, %c0_14], %20 {strides = array<i32>} : memref<128x128xf32, #tpu.memory_space<vmem>>, vector<128x128xf32>,
    return
  }
  func.func @transform_0(%arg0: i32) -> (i32, i32) {
    %c0_i32 = arith.constant 0 : i32
    %c0_i32_0 = arith.constant 0 : i32
    return %arg0, %c0_i32 : i32, i32
  }
  func.func @transform_1(%arg0: i32) -> (i32, i32) {
    %c0_i32 = arith.constant 0 : i32
    %c0_i32_0 = arith.constant 0 : i32
    %c0_i32_1 = arith.constant 0 : i32
    return %c0_i32, %c0_i32_0 : i32, i32
  }
  func.func @transform_2(%arg0: i32) -> (i32, i32) {
    %c0_i32 = arith.constant 0 : i32
    %c0_i32_0 = arith.constant 0 : i32
    %c0_i32_1 = arith.constant 0 : i32
    return %c0_i32, %c0_i32_0 : i32, i32
  }
  func.func @transform_3(%arg0: i32) -> (i32, i32) {
    %c0_i32 = arith.constant 0 : i32
    %c0_i32_0 = arith.constant 0 : i32
    %c0_i32_1 = arith.constant 0 : i32
    return %c0_i32, %c0_i32_0 : i32, i32
  }
  func.func @transform_4(%arg0: i32) -> (i32, i32) {
    %c0_i32 = arith.constant 0 : i32
    %c0_i32_0 = arith.constant 0 : i32
    %c0_i32_1 = arith.constant 0 : i32
    return %c0_i32, %c0_i32_0 : i32, i32
  }
  func.func @transform_5(%arg0: i32) -> (i32, i32) {
    %c0_i32 = arith.constant 0 : i32
    %c0_i32_0 = arith.constant 0 : i32
    return %arg0, %c0_i32 : i32, i32
  }
}

</mosaic_0001>

<bundles_post_ra>
// kernel: mlp_pallas.1
= control target key start
LH: loop header
LB: loop body
LE: loop exit
PB: predicated region body
PF: predicated region fallthrough
CT: control target
= control target key end

     0   :  { %s881_s1 = inlined_call_operand.vmem [shape: bf16[128,128], index: 1, kind: input, shape index: {}]   ;;  %s882_s0 = inlined_call_operand.vmem [shape: f32[128,128], index: 0, kind: input, shape index: {}]   ;;  %s883_s3 = inlined_call_operand.vmem [shape: bf16[128,128], index: 3, kind: input, shape index: {}]   ;;  %s884_s2 = inlined_call_operand.vmem [shape: f32[1,128], index: 2, kind: input, shape index: {}]   ;;  %s885_s4 = inlined_call_operand.vmem [shape: f32[1,128], index: 4, kind: input, shape index: {}]   ;;  %s886_s5 = inlined_call_operand.vmem [shape: f32[128,128], index: 5, kind: output, shape index: {}]  }
   0x1   :  { %v603_v0 = vld [vmem:[%s881_s1 + $0x38] sm:$0xff]   ;;  %v604_v1 = vld [vmem:[%s881_s1 + $0x30] sm:$0xff]   ;;  %v605_v2 = vld [vmem:[%s881_s1 + $0x28] sm:$0xff]  }
   0x2   :  { %539 = vmatprep.subr.bf16.mxu0 %v603_v0  ;;  %v606_v3 = vld [vmem:[%s881_s1 + $0x20] sm:$0xff]   ;;  %v22_v5 = vld [vmem:[%s882_s0 + $0x8] sm:$0xff]  ;;  %v607_v7 = vld [vmem:[%s881_s1 + $0x18] sm:$0xff]  }
   0x3   :  { %540 = vmatpush3.bf16.msra.mxu0 %v603_v0  ;;  %v21_v4 = vld [vmem:[%s882_s0] sm:$0xff]  ;;  %v608_v8 = vld [vmem:[%s881_s1 + $0x10] sm:$0xff]   ;;  %v609_v9 = vld [vmem:[%s881_s1 + $0x8] sm:$0xff]  }
   0x4   :  { %541 = vmatprep.subr.bf16.mxu0 %v604_v1  ;;  %v37_v6 = vpack.c.bf16 %v22_v5, %v21_v4  ;;  %v610_v10 = vld [vmem:[%s881_s1] sm:$0xff]   ;;  %v23_v11 = vld [vmem:[%s882_s0 + $0x10] sm:$0xff]  ;;  %v24_v12 = vld [vmem:[%s882_s0 + $0x18] sm:$0xff] }
   0x5   :  { %v25_v13 = vld [vmem:[%s882_s0 + $0x20] sm:$0xff]  ;;  %v26_v14 = vld [vmem:[%s882_s0 + $0x28] sm:$0xff]  ;;  %v38_v15 = vpack.c.bf16 %v24_v12, %v23_v11  ;;  %v27_v17 = vld [vmem:[%s882_s0 + $0x30] sm:$0xff] }
   0x6   :  { %555 = vmatprep.mubr.bf16.mxu0 %v37_v6  ;;  %v39_v16 = vpack.c.bf16 %v26_v14, %v25_v13  ;;  %v28_v18 = vld [vmem:[%s882_s0 + $0x38] sm:$0xff]  ;;  %v29_v19 = vld [vmem:[%s882_s0 + $0x40] sm:$0xff]  ;;  %v30_v20 = vld [vmem:[%s882_s0 + $0x48] sm:$0xff] }
   0x7   :  { %542 = vmatpush3.bf16.msra.mxu0 %v604_v1  ;;  %v40_v21 = vpack.c.bf16 %v28_v18, %v27_v17  ;;  %v41_v22 = vpack.c.bf16 %v30_v20, %v29_v19  ;;  %v31_v23 = vld [vmem:[%s882_s0 + $0x50] sm:$0xff]  ;;  %v32_v24 = vld [vmem:[%s882_s0 + $0x58] sm:$0xff]  ;;  %v33_v25 = vld [vmem:[%s882_s0 + $0x60] sm:$0xff] }
   0x8   :  { %543 = vmatprep.subr.bf16.mxu0 %v605_v2  ;;  %v34_v26 = vld [vmem:[%s882_s0 + $0x68] sm:$0xff]  ;;  %v42_v27 = vpack.c.bf16 %v32_v24, %v31_v23  ;;  %v35_v29 = vld [vmem:[%s882_s0 + $0x70] sm:$0xff]  ;;  %v36_v30 = vld [vmem:[%s882_s0 + $0x78] sm:$0xff] }
   0x9   :  { %v43_v28 = vpack.c.bf16 %v34_v26, %v33_v25  ;;  %v44_v31 = vpack.c.bf16 %v36_v30, %v35_v29  ;;  %v611_v32 = vld [vmem:[%s883_s3 + $0x38] sm:$0xff]   ;;  %v612_v33 = vld [vmem:[%s883_s3 + $0x30] sm:$0xff]   ;;  %v613_v34 = vld [vmem:[%s883_s3 + $0x28] sm:$0xff]  }
   0xa   :  { %571 = vmatprep.subr.bf16.mxu1 %v611_v32  ;;  %v614_v35 = vld [vmem:[%s883_s3 + $0x20] sm:$0xff]   ;;  %v615_v36 = vld [vmem:[%s883_s3 + $0x18] sm:$0xff]   ;;  %v616_v37 = vld [vmem:[%s883_s3 + $0x10] sm:$0xff]  }
   0xb   :  { %544 = vmatpush3.bf16.msra.mxu0 %v605_v2  ;;  %572 = vmatpush3.bf16.msra.mxu1 %v611_v32  ;;  %v617_v38 = vld [vmem:[%s883_s3 + $0x8] sm:$0xff]   ;;  %v618_v39 = vld [vmem:[%s883_s3] sm:$0xff]  }
   0xc   :  { %545 = vmatprep.subr.bf16.mxu0 %v606_v3  ;;  %573 = vmatprep.subr.bf16.mxu1 %v612_v33  ;;  %v780_v40 = vld [vmem:[%s884_s2] ss:$0 sm:$0xff] }
   0xf   :  { %546 = vmatpush3.bf16.msra.mxu0 %v606_v3  ;;  %574 = vmatpush3.bf16.msra.mxu1 %v612_v33 }
  0x10   :  { %547 = vmatprep.subr.bf16.mxu0 %v607_v7  ;;  %575 = vmatprep.subr.bf16.mxu1 %v613_v34 }
  0x13   :  { %548 = vmatpush3.bf16.msra.mxu0 %v607_v7  ;;  %576 = vmatpush3.bf16.msra.mxu1 %v613_v34 }
  0x14   :  { %549 = vmatprep.subr.bf16.mxu0 %v608_v8  ;;  %577 = vmatprep.subr.bf16.mxu1 %v614_v35 }
  0x17   :  { %550 = vmatpush3.bf16.msra.mxu0 %v608_v8  ;;  %578 = vmatpush3.bf16.msra.mxu1 %v614_v35 }
  0x18   :  { %551 = vmatprep.subr.bf16.mxu0 %v609_v9  ;;  %579 = vmatprep.subr.bf16.mxu1 %v615_v36 }
  0x1b   :  { %552 = vmatpush3.bf16.msra.mxu0 %v609_v9  ;;  %580 = vmatpush3.bf16.msra.mxu1 %v615_v36 }
  0x1c   :  { %553 = vmatprep.subr.bf16.mxu0 %v610_v10  ;;  %581 = vmatprep.subr.bf16.mxu1 %v616_v37 }
  0x1f   :  { %554 = vmatpush3.bf16.msra.mxu0 %v610_v10  ;;  %582 = vmatpush3.bf16.msra.mxu1 %v616_v37 }
  0x20   :  { %583 = vmatprep.subr.bf16.mxu1 %v617_v38 }
  0x22   :  { %556 = vmatmul.mubr.bf16.vlgmr.msra.gmra.mxu0 %v38_v15 }
  0x23   :  { %559 = vmatprep.mubr.bf16.mxu0 %v39_v16  ;;  %584 = vmatpush3.bf16.msra.mxu1 %v617_v38 }
  0x24   :  { %585 = vmatprep.subr.bf16.mxu1 %v618_v39 }
  0x27   :  { %586 = vmatpush3.bf16.msra.mxu1 %v618_v39 }
  0x2a   :  { %560 = vmatmul.mubr.bf16.gmra.mxu0 %v40_v21 }
  0x2b   :  { %563 = vmatprep.mubr.bf16.mxu0 %v41_v22 }
  0x32   :  { %564 = vmatmul.mubr.bf16.gmra.mxu0 %v42_v27 }
  0x33   :  { %567 = vmatprep.mubr.bf16.mxu0 %v43_v28 }
  0x3a   :  { %568 = vmatmul.mubr.bf16.gmra.mxu0 %v44_v31 }
  0xe2   :  { %v557_v41 = vpop.f32.mrf.mxu0 }
  0xe3   :  { %v159_v42 = vadd.f32 %v557_v41, %v780_v40 }
  0xe4   :  { %v150_v43 = vpop.f32.mrf.mxu0 }
  0xe5   :  { %v231_v44 = vmul.f32 0.70710677, %v159_v42  ;;  %v151_v45 = vadd.f32 %v780_v40, %v150_v43  ;;  %v215_v21 = vmul.f32 0.5, %v159_v42 }
  0xe6   :  { %v558_v46 = vpop.f32.mrf.mxu0 }
  0xe7   :  { %v229_v47 = vmul.f32 0.70710677, %v151_v45  ;;  %v162_v48 = vadd.f32 %v558_v46, %v780_v40  ;;  %619 = verf.f32 %v231_v44  ;;  %v213_v22 = vmul.f32 0.5, %v151_v45 }
  0xe8   :  { %v153_v49 = vpop.f32.mrf.mxu0 }
  0xe9   :  { %v232_v50 = vmul.f32 0.70710677, %v162_v48  ;;  %v154_v51 = vadd.f32 %v780_v40, %v153_v49  ;;  %621 = verf.f32 %v229_v47  ;;  %v216_v18 = vmul.f32 0.5, %v162_v48 }
  0xea   :  { %v561_v52 = vpop.f32.mrf.mxu0 }
  0xeb   :  { %623 = verf.f32 %v232_v50  ;;  %v230_v53 = vmul.f32 0.70710677, %v154_v51  ;;  %v787_v54 = vadd.f32 %v561_v52, %v780_v40  ;;  %v214_v25 = vmul.f32 0.5, %v154_v51 }
  0xec   :  { %v166_v55 = vpop.f32.mrf.mxu0 }
  0xed   :  { %625 = verf.f32 %v230_v53  ;;  %v790_v56 = vadd.f32 %v780_v40, %v166_v55  ;;  %v235_v57 = vmul.f32 0.70710677, %v787_v54 }
  0xee   :  { %v562_v58 = vpop.f32.mrf.mxu0 }
  0xef   :  { %v233_v59 = vmul.f32 0.70710677, %v790_v56  ;;  %v178_v60 = vadd.f32 %v562_v58, %v780_v40  ;;  %v217_v48 = vmul.f32 0.5, %v790_v56 }
  0xf0   :  { %v169_v61 = vpop.f32.mrf.mxu0 }
  0xf1   :  { %627 = verf.f32 %v233_v59  ;;  %v236_v62 = vmul.f32 0.70710677, %v178_v60  ;;  %v170_v63 = vadd.f32 %v780_v40, %v169_v61  ;;  %v220_v49 = vmul.f32 0.5, %v178_v60 }
  0xf2   :  { %629 = verf.f32 %v235_v57  ;;  %v565_v0 = vpop.f32.mrf.mxu0  ;;  %v219_v57 = vmul.f32 0.5, %v787_v54 }
  0xf3   :  { %631 = verf.f32 %v236_v62  ;;  %v234_v1 = vmul.f32 0.70710677, %v170_v63  ;;  %v797_v2 = vadd.f32 %v565_v0, %v780_v40  ;;  %v218_v50 = vmul.f32 0.5, %v170_v63 }
  0xf4   :  { %v182_v3 = vpop.f32.mrf.mxu0  ;;  %v620_v5 = vpop.eup %619 }
  0xf5   :  { %633 = verf.f32 %v234_v1  ;;  %v239_v4 = vmul.f32 0.70710677, %v797_v2  ;;  %v801_v6 = vadd.f32 %v780_v40, %v182_v3  ;;  %v263_v17 = vadd.f32 1.0, %v620_v5 }
  0xf6   :  { %v566_v7 = vpop.f32.mrf.mxu0  ;;  %v622_v8 = vpop.eup %621 }
  0xf7   :  { %v804_v9 = vadd.f32 %v566_v7, %v780_v40  ;;  %v237_v11 = vmul.f32 0.70710677, %v801_v6  ;;  %635 = verf.f32 %v239_v4  ;;  %v261_v20 = vadd.f32 1.0, %v622_v8 }
  0xf8   :  { %v624_v10 = vpop.eup %623  ;;  %v185_v12 = vpop.f32.mrf.mxu0  ;;  %v279_v31 = vmul.f32 %v263_v17, %v215_v21  ;;  %v221_v5 = vmul.f32 0.5, %v801_v6 }
  0xf9   :  { %v264_v13 = vadd.f32 1.0, %v624_v10  ;;  %v240_v14 = vmul.f32 0.70710677, %v804_v9  ;;  %v809_v15 = vadd.f32 %v780_v40, %v185_v12  ;;  %637 = verf.f32 %v237_v11 }
  0xfa   :  { %v626_v16 = vpop.eup %625  ;;  %v569_v19 = vpop.f32.mrf.mxu0  ;;  %v277_v33 = vmul.f32 %v261_v20, %v213_v22  ;;  %v224_v54 = vmul.f32 0.5, %v804_v9  ;;  %v223_v11 = vmul.f32 0.5, %v797_v2 }
  0xfb   :  { %639 = verf.f32 %v240_v14  ;;  %v238_v23 = vmul.f32 0.70710677, %v809_v15  ;;  %v280_v24 = vmul.f32 %v264_v13, %v216_v18  ;;  %v813_v26 = vadd.f32 %v569_v19, %v780_v40 }
  0xfc   :  { %v198_v27 = vpop.f32.mrf.mxu0  ;;  %v262_v28 = vadd.f32 1.0, %v626_v16  ;;  %v222_v8 = vmul.f32 0.5, %v809_v15 }
  0xfd   :  { %641 = verf.f32 %v238_v23  ;;  %v816_v29 = vadd.f32 %v780_v40, %v198_v27  ;;  %v243_v36 = vmul.f32 0.70710677, %v813_v26  ;;  %v294_v43 = vpack.c.bf16 %v280_v24, %v279_v31 }
  0xfe   :  { %v628_v30 = vpop.eup %627  ;;  %v570_v32 = vpop.f32.mrf.mxu0  ;;  %v278_v34 = vmul.f32 %v262_v28, %v214_v25  ;;  %v227_v2 = vmul.f32 0.5, %v813_v26 }
  0xff   :  { %v630_v35 = vpop.eup %629  ;;  %v241_v37 = vmul.f32 0.70710677, %v816_v29  ;;  %v210_v39 = vadd.f32 %v570_v32, %v780_v40  ;;  %v265_v44 = vadd.f32 1.0, %v628_v30  ;;  %v225_v9 = vmul.f32 0.5, %v816_v29  ;;  %v498_v29 = vld [vmem:[%s885_s4] ss:$0 sm:$0xff] }
 0x100   :  { %v632_v38 = vpop.eup %631  ;;  %v201_v41 = vpop.f32.mrf.mxu0  ;;  %v293_v42 = vpack.c.bf16 %v278_v34, %v277_v33  ;;  %v267_v52 = vadd.f32 1.0, %v630_v35 }
 0x101   :  { %v268_v45 = vadd.f32 1.0, %v632_v38  ;;  %643 = verf.f32 %v241_v37  ;;  %v202_v46 = vadd.f32 %v780_v40, %v201_v41  ;;  %v244_v51 = vmul.f32 0.70710677, %v210_v39 }
 0x102   :  { %v634_v47 = vpop.eup %633  ;;  %587 = vmatprep.mubr.bf16.mxu1 %v293_v42  ;;  %645 = verf.f32 %v243_v36  ;;  %v281_v58 = vmul.f32 %v265_v44, %v217_v48  ;;  %v283_v0 = vmul.f32 %v267_v52, %v219_v57  ;;  %v228_v24 = vmul.f32 0.5, %v210_v39 }
 0x103   :  { %v266_v53 = vadd.f32 1.0, %v634_v47  ;;  %v242_v55 = vmul.f32 0.70710677, %v202_v46  ;;  %588 = vmatmul.mubr.bf16.vlgmr.msra.gmra.mxu1 %v294_v43  ;;  %647 = verf.f32 %v244_v51  ;;  %v284_v59 = vmul.f32 %v268_v45, %v220_v49 }
 0x104   :  { %v636_v40 = vpop.eup %635  ;;  %v226_v25 = vmul.f32 0.5, %v202_v46 }
 0x105   :  { %v282_v61 = vmul.f32 %v266_v53, %v218_v50  ;;  %649 = verf.f32 %v242_v55  ;;  %v296_v3 = vpack.c.bf16 %v284_v59, %v283_v0  ;;  %v271_v7 = vadd.f32 1.0, %v636_v40 }
 0x106   :  { %v638_v62 = vpop.eup %637 }
 0x107   :  { %v295_v56 = vpack.c.bf16 %v282_v61, %v281_v58  ;;  %v269_v63 = vadd.f32 1.0, %v638_v62  ;;  %v287_v17 = vmul.f32 %v271_v7, %v223_v11 }
 0x108   :  { %v640_v60 = vpop.eup %639 }
 0x109   :  { %v272_v1 = vadd.f32 1.0, %v640_v60  ;;  %591 = vmatprep.mubr.bf16.mxu1 %v295_v56  ;;  %v285_v12 = vmul.f32 %v269_v63, %v221_v5 }
 0x10a   :  { %v642_v4 = vpop.eup %641 }
 0x10b   :  { %v270_v10 = vadd.f32 1.0, %v642_v4  ;;  %592 = vmatmul.mubr.bf16.gmra.mxu1 %v296_v3  ;;  %v288_v13 = vmul.f32 %v272_v1, %v224_v54 }
 0x10d   :  { %v286_v14 = vmul.f32 %v270_v10, %v222_v8  ;;  %v298_v6 = vpack.c.bf16 %v288_v13, %v287_v17 }
 0x10e   :  { %v644_v16 = vpop.eup %643 }
 0x10f   :  { %v297_v18 = vpack.c.bf16 %v286_v14, %v285_v12  ;;  %v646_v19 = vpop.eup %645  ;;  %v273_v21 = vadd.f32 1.0, %v644_v16 }
 0x110   :  { %v648_v20 = vpop.eup %647  ;;  %v275_v15 = vadd.f32 1.0, %v646_v19 }
 0x111   :  { %595 = vmatprep.mubr.bf16.mxu1 %v297_v18  ;;  %v276_v23 = vadd.f32 1.0, %v648_v20  ;;  %v289_v28 = vmul.f32 %v273_v21, %v225_v9 }
 0x112   :  { %v650_v22 = vpop.eup %649  ;;  %v291_v32 = vmul.f32 %v275_v15, %v227_v2 }
 0x113   :  { %v274_v27 = vadd.f32 1.0, %v650_v22  ;;  %596 = vmatmul.mubr.bf16.gmra.mxu1 %v298_v6  ;;  %v292_v30 = vmul.f32 %v276_v23, %v228_v24 }
 0x115   :  { %v290_v31 = vmul.f32 %v274_v27, %v226_v25  ;;  %v300_v34 = vpack.c.bf16 %v292_v30, %v291_v32 }
 0x117   :  { %v299_v33 = vpack.c.bf16 %v290_v31, %v289_v28 }
 0x119   :  { %599 = vmatprep.mubr.bf16.mxu1 %v299_v33 }
 0x11b   :  { %600 = vmatmul.mubr.bf16.gmra.mxu1 %v300_v34 }
 0x1c3   :  { %v589_v35 = vpop.f32.mrf.mxu1 }
 0x1c4   :  { %v415_v36 = vadd.f32 %v589_v35, %v498_v29 }
 0x1c5   :  { %v406_v37 = vpop.f32.mrf.mxu1 }
 0x1c6   :  { %471 = vst [vmem:[%s886_s5 + $0x10] sm:$0xff] %v415_v36  ;;  %v407_v26 = vadd.f32 %v498_v29, %v406_v37 }
 0x1c7   :  { %v590_v38 = vpop.f32.mrf.mxu1 }
 0x1c8   :  { %469 = vst [vmem:[%s886_s5] sm:$0xff] %v407_v26  ;;  %v418_v39 = vadd.f32 %v590_v38, %v498_v29 }
 0x1c9   :  { %v409_v41 = vpop.f32.mrf.mxu1 }
 0x1ca   :  { %472 = vst [vmem:[%s886_s5 + $0x18] sm:$0xff] %v418_v39  ;;  %v410_v42 = vadd.f32 %v498_v29, %v409_v41 }
 0x1cb   :  { %v593_v43 = vpop.f32.mrf.mxu1 }
 0x1cc   :  { %470 = vst [vmem:[%s886_s5 + $0x8] sm:$0xff] %v410_v42  ;;  %v431_v44 = vadd.f32 %v593_v43, %v498_v29 }
 0x1cd   :  { %v422_v45 = vpop.f32.mrf.mxu1 }
 0x1ce   :  { %475 = vst [vmem:[%s886_s5 + $0x30] sm:$0xff] %v431_v44  ;;  %v423_v46 = vadd.f32 %v498_v29, %v422_v45 }
 0x1cf   :  { %v594_v47 = vpop.f32.mrf.mxu1 }
 0x1d0   :  { %473 = vst [vmem:[%s886_s5 + $0x20] sm:$0xff] %v423_v46  ;;  %v434_v48 = vadd.f32 %v594_v47, %v498_v29 }
 0x1d1   :  { %v425_v49 = vpop.f32.mrf.mxu1 }
 0x1d2   :  { %476 = vst [vmem:[%s886_s5 + $0x38] sm:$0xff] %v434_v48  ;;  %v426_v50 = vadd.f32 %v498_v29, %v425_v49 }
 0x1d3   :  { %v597_v51 = vpop.f32.mrf.mxu1 }
 0x1d4   :  { %474 = vst [vmem:[%s886_s5 + $0x28] sm:$0xff] %v426_v50  ;;  %v447_v52 = vadd.f32 %v597_v51, %v498_v29 }
 0x1d5   :  { %v438_v53 = vpop.f32.mrf.mxu1 }
 0x1d6   :  { %479 = vst [vmem:[%s886_s5 + $0x50] sm:$0xff] %v447_v52  ;;  %v439_v55 = vadd.f32 %v498_v29, %v438_v53 }
 0x1d7   :  { %v598_v57 = vpop.f32.mrf.mxu1 }
 0x1d8   :  { %477 = vst [vmem:[%s886_s5 + $0x40] sm:$0xff] %v439_v55  ;;  %v450_v58 = vadd.f32 %v598_v57, %v498_v29 }
 0x1d9   :  { %v441_v59 = vpop.f32.mrf.mxu1 }
 0x1da   :  { %480 = vst [vmem:[%s886_s5 + $0x58] sm:$0xff] %v450_v58  ;;  %v442_v61 = vadd.f32 %v498_v29, %v441_v59 }
 0x1db   :  { %v601_v40 = vpop.f32.mrf.mxu1 }
 0x1dc   :  { %478 = vst [vmem:[%s886_s5 + $0x48] sm:$0xff] %v442_v61  ;;  %v463_v62 = vadd.f32 %v601_v40, %v498_v29 }
 0x1dd   :  { %v454_v0 = vpop.f32.mrf.mxu1 }
 0x1de   :  { %483 = vst [vmem:[%s886_s5 + $0x70] sm:$0xff] %v463_v62  ;;  %v455_v56 = vadd.f32 %v498_v29, %v454_v0 }
 0x1df   :  { %v602_v60 = vpop.f32.mrf.mxu1 }
 0x1e0   :  { %481 = vst [vmem:[%s886_s5 + $0x60] sm:$0xff] %v455_v56  ;;  %v466_v63 = vadd.f32 %v602_v60, %v498_v29 }
 0x1e1   :  { %v457_v1 = vpop.f32.mrf.mxu1 }
 0x1e2   :  { %484 = vst [vmem:[%s886_s5 + $0x78] sm:$0xff] %v466_v63  ;;  %v458_v3 = vadd.f32 %v498_v29, %v457_v1 }
 0x1e4   :  { %482 = vst [vmem:[%s886_s5 + $0x68] sm:$0xff] %v458_v3 }

</bundles_post_ra>
